<compile_context>
chip_gen: v5e
topology: v5e:2x2
jax: 0.10.0
libtpu: 0.0.40
codegen_flags: <defaults>
</compile_context>

<pallas_src>
import functools

import jax
import jax.numpy as jnp
import numpy as np
from jax import lax
from jax.experimental import pallas as pl
from jax.experimental.pallas import tpu as pltpu


# ------------------------------ small helpers -------------------------------- #

def _round_up(x, m):
    return (x + m - 1) // m * m


def _vmem_capacity_bytes():
    try:
        info = pltpu.get_tpu_info()
        cap = getattr(info, "vmem_capacity_bytes", None)
        if cap:
            return int(cap)
    except Exception:
        pass
    return 64 * 1024 * 1024  # conservative (v7x-sized) fallback


def _seq_tile(n, pref=256):
    for cand in (pref, 256, 128, 64, 32, 16, 8):
        if cand <= n and n % cand == 0:
            return cand
    # TODO(synk): sequence lengths not divisible by 8 fall back to a single block.
    return n


# --------------------------- tiled linear kernels ---------------------------- #

def _matmul_kernel(x_ref, w_ref, o_ref, acc_ref):
    @pl.when(pl.program_id(2) == 0)
    def _():
        acc_ref[...] = jnp.zeros_like(acc_ref)

    acc_ref[...] += jnp.dot(x_ref[...], w_ref[...],
                            preferred_element_type=jnp.float32)

    @pl.when(pl.program_id(2) == pl.num_programs(2) - 1)
    def _():
        o_ref[...] = acc_ref[...].astype(o_ref.dtype)


def _matmul_bias_kernel(x_ref, w_ref, b_ref, o_ref, acc_ref):
    @pl.when(pl.program_id(2) == 0)
    def _():
        acc_ref[...] = jnp.zeros_like(acc_ref)

    acc_ref[...] += jnp.dot(x_ref[...], w_ref[...],
                            preferred_element_type=jnp.float32)

    @pl.when(pl.program_id(2) == pl.num_programs(2) - 1)
    def _():
        o_ref[...] = (acc_ref[...] + b_ref[...]).astype(o_ref.dtype)


def pallas_linear(x2d, w, b=None, *, out_dtype=jnp.bfloat16):
    """y = x2d @ w (+ b). x2d / w are expected already cast to bf16."""
    m, k = x2d.shape
    k2, nout = w.shape
    assert k == k2

    cap = _vmem_capacity_bytes()
    if cap >= 100 * 1024 * 1024:   # v5e / v6e: 128 MiB physical VMEM
        tm_p, tn_p, tk_p, vmem = 512, 512, 1024, 96 * 1024 * 1024
    else:                          # v7x: 64 MiB physical VMEM
        tm_p, tn_p, tk_p, vmem = 256, 256, 512, 32 * 1024 * 1024

    tm = min(tm_p, _round_up(m, 8))
    tk = k if k <= tk_p else tk_p
    tn = nout if nout <= tn_p else tn_p

    mp, kp, np_ = _round_up(m, tm), _round_up(k, tk), _round_up(nout, tn)
    if (mp, kp) != (m, k):
        x2d = jnp.pad(x2d, ((0, mp - m), (0, kp - k)))
    if (kp, np_) != (k, nout):
        w = jnp.pad(w, ((0, kp - k), (0, np_ - nout)))
    if b is not None and np_ != nout:
        b = jnp.pad(b, ((0, 0), (0, np_ - nout)))

    in_specs = [
        pl.BlockSpec((tm, tk), lambda i, j, kk: (i, kk)),
        pl.BlockSpec((tk, tn), lambda i, j, kk: (kk, j)),
    ]
    args = (x2d, w)
    kernel = _matmul_kernel
    if b is not None:
        in_specs.append(pl.BlockSpec((1, tn), lambda i, j, kk: (0, j)))
        args = (x2d, w, b)
        kernel = _matmul_bias_kernel

    out = pl.pallas_call(
        kernel,
        out_shape=jax.ShapeDtypeStruct((mp, np_), out_dtype),
        grid_spec=pltpu.PrefetchScalarGridSpec(
            num_scalar_prefetch=0,
            grid=(mp // tm, np_ // tn, kp // tk),
            in_specs=in_specs,
            out_specs=pl.BlockSpec((tm, tn), lambda i, j, kk: (i, j)),
            scratch_shapes=[pltpu.VMEM((tm, tn), jnp.float32)]),
        compiler_params=pltpu.CompilerParams(
            dimension_semantics=("parallel", "parallel", "arbitrary"),
            vmem_limit_bytes=vmem),
    )(*args)

    if (mp, np_) != (m, nout):
        out = out[:m, :nout]
    return out


# ---------------------- flash-style GQA attention kernel --------------------- #

def _flash_gqa_kernel(q_ref, k_ref, v_ref, cq_ref, sq_ref, ck_ref, sk_ref,
                      o_ref, qs_ref, m_ref, l_ref, acc_ref, *, half):
    ki = pl.program_id(3)

    @pl.when(ki == 0)
    def _():
        # RoPE (scale folded into cq/sq, rotate-half sign folded into sq) is
        # applied to the stacked q tile once per (batch, kv_head, q_tile).
        q = q_ref[0, 0].astype(jnp.float32)                       # (g*tq, d)
        q_rot = jnp.concatenate([q[:, half:], q[:, :half]], axis=-1)
        qs_ref[...] = (q * cq_ref[...] + q_rot * sq_ref[...]).astype(jnp.bfloat16)
        m_ref[...] = jnp.full(m_ref.shape, -jnp.inf, dtype=jnp.float32)
        l_ref[...] = jnp.zeros_like(l_ref)
        acc_ref[...] = jnp.zeros_like(acc_ref)

    # RoPE on the current k tile (v is never rotated).
    k = k_ref[0, 0].astype(jnp.float32)                           # (tk, d)
    k_rot = jnp.concatenate([k[:, half:], k[:, :half]], axis=-1)
    k_bf = (k * ck_ref[...] + k_rot * sk_ref[...]).astype(jnp.bfloat16)

    # QK^T, contracting the last axes directly (no .T materialization).
    s = lax.dot_general(qs_ref[...], k_bf, (((1,), (1,)), ((), ())),
                        preferred_element_type=jnp.float32)       # (g*tq, tk)

    # online softmax
    m_prev = m_ref[...]
    m_new = jnp.maximum(m_prev, jnp.max(s, axis=-1, keepdims=True))
    alpha = jnp.exp(m_prev - m_new)
    p = jnp.exp(s - m_new)
    l_ref[...] = alpha * l_ref[...] + jnp.sum(p, axis=-1, keepdims=True)
    acc_ref[...] = alpha * acc_ref[...] + jnp.dot(
        p.astype(jnp.bfloat16), v_ref[0, 0], preferred_element_type=jnp.float32)
    m_ref[...] = m_new

    @pl.when(ki == pl.num_programs(3) - 1)
    def _():
        # dropout p = 0.0 -> identity
        o_ref[0, 0] = (acc_ref[...] *
                       pl.reciprocal(l_ref[...], approx=True)).astype(o_ref.dtype)


def pallas_gqa_attention(q, k, v, cq, sq, ck, sk):
    b, kvh, ng, d = q.shape
    n = k.shape[2]
    g = ng // n
    tq = _seq_tile(n)
    tk = _seq_tile(n)
    tqg = tq * g

    kernel = functools.partial(_flash_gqa_kernel, half=d // 2)
    return pl.pallas_call(
        kernel,
        out_shape=jax.ShapeDtypeStruct((b, kvh, ng, d), jnp.bfloat16),
        grid_spec=pltpu.PrefetchScalarGridSpec(
            num_scalar_prefetch=0,
            grid=(b, kvh, n // tq, n // tk),
            in_specs=[
                pl.BlockSpec((1, 1, tqg, d), lambda bi, hi, qi, ki: (bi, hi, qi, 0)),
                pl.BlockSpec((1, 1, tk, d), lambda bi, hi, qi, ki: (bi, hi, ki, 0)),
                pl.BlockSpec((1, 1, tk, d), lambda bi, hi, qi, ki: (bi, hi, ki, 0)),
                pl.BlockSpec((tqg, d), lambda bi, hi, qi, ki: (qi, 0)),
                pl.BlockSpec((tqg, d), lambda bi, hi, qi, ki: (qi, 0)),
                pl.BlockSpec((tk, d), lambda bi, hi, qi, ki: (ki, 0)),
                pl.BlockSpec((tk, d), lambda bi, hi, qi, ki: (ki, 0)),
            ],
            out_specs=pl.BlockSpec((1, 1, tqg, d),
                                   lambda bi, hi, qi, ki: (bi, hi, qi, 0)),
            scratch_shapes=[
                pltpu.VMEM((tqg, d), jnp.bfloat16),   # roped + scaled q tile
                pltpu.VMEM((tqg, 1), jnp.float32),    # running max
                pltpu.VMEM((tqg, 1), jnp.float32),    # running sum
                pltpu.VMEM((tqg, d), jnp.float32),    # output accumulator
            ]),
        compiler_params=pltpu.CompilerParams(
            dimension_semantics=("parallel", "parallel", "parallel", "arbitrary"),
            vmem_limit_bytes=32 * 1024 * 1024),
    )(q, k, v, cq, sq, ck, sk)


# ------------------------------ RoPE tables ---------------------------------- #

def _rope_tables(n, d, g, scale):
    half = d // 2
    inv_freq = 1.0 / (10000.0 ** (jnp.arange(0, d, 2, dtype=jnp.float32) / d))
    freqs = jnp.arange(n, dtype=jnp.float32)[:, None] * inv_freq[None, :]
    freqs = jnp.concatenate([freqs, freqs], axis=-1)               # (n, d)
    cos = jnp.cos(freqs)
    sin = jnp.sin(freqs)
    # rotate_half(x)*sin == concat(x2, x1)*concat(-sin_half, sin_half)
    sin_signed = jnp.concatenate([-sin[:, :half], sin[:, half:]], axis=-1)
    # q tables: rows follow the (position, group-member) stacking of the q
    # layout; softmax scale folded in.
    cq = jnp.repeat(cos * scale, g, axis=0)                        # (n*g, d)
    sq = jnp.repeat(sin_signed * scale, g, axis=0)
    return cq, sq, cos, sin_signed


# ------------------------------ forward pass --------------------------------- #

@functools.partial(jax.jit, static_argnames=("heads", "kv_heads", "dim_head"))
def gqa_forward(x, wq, wkv, wo, bo, *, heads, kv_heads, dim_head):
    b, n, dim = x.shape
    d = dim_head
    g = heads // kv_heads
    inner = heads * d
    scale = d ** (-0.5)

    x2 = x.reshape(b * n, dim).astype(jnp.bfloat16)
    wq_b = wq.astype(jnp.bfloat16)
    wkv_b = wkv.astype(jnp.bfloat16)
    wo_b = wo.astype(jnp.bfloat16)

    # projections (bf16 in / bf16 out, f32 accumulation)
    q = pallas_linear(x2, wq_b)                                    # (b*n, h*d)
    kv = pallas_linear(x2, wkv_b)                                  # (b*n, 2*kvh*d)

    # head-major, group-stacked layouts for the attention kernel (bf16 relayout)
    q = q.reshape(b, n, kv_heads, g, d).transpose(0, 2, 1, 3, 4)
    q = q.reshape(b, kv_heads, n * g, d)                           # rows = (pos, group)
    kv5 = kv.reshape(b, n, 2, kv_heads, d)
    k = kv5[:, :, 0].transpose(0, 2, 1, 3)                         # (b, kvh, n, d)
    v = kv5[:, :, 1].transpose(0, 2, 1, 3)                         # (b, kvh, n, d)

    cq, sq, ck, sk = _rope_tables(n, d, g, scale)

    o = pallas_gqa_attention(q, k, v, cq, sq, ck, sk)              # (b, kvh, n*g, d)

    o = o.reshape(b, kv_heads, n, g, d).transpose(0, 2, 1, 3, 4)
    o = o.reshape(b * n, inner)                                    # 'b n (h d)'

    y = pallas_linear(o, wo_b, bo.astype(jnp.float32), out_dtype=jnp.float32)
    return y.reshape(b, n, dim)


# --------------------------- pure-JAX reference ------------------------------- #

def gqa_reference(x, wq, wkv, wo, bo, *, heads, kv_heads, dim_head):
    b, n, dim = x.shape
    g = heads // kv_heads
    scale = dim_head ** (-0.5)

    q = (x.reshape(b * n, dim) @ wq).reshape(b, n, heads, dim_head).transpose(0, 2, 1, 3)
    kv = (x.reshape(b * n, dim) @ wkv).reshape(b, n, 2 * kv_heads, dim_head)
    k = kv[:, :, :kv_heads].transpose(0, 2, 1, 3)
    v = kv[:, :, kv_heads:].transpose(0, 2, 1, 3)

    inv_freq = 1.0 / (10000.0 ** (jnp.arange(0, dim_head, 2, dtype=jnp.float32) / dim_head))
    freqs = jnp.einsum("i,j->ij", jnp.arange(n, dtype=jnp.float32), inv_freq)
    freqs = jnp.concatenate([freqs, freqs], axis=-1)

    def rot_half(t):
        t1, t2 = jnp.split(t, 2, axis=-1)
        return jnp.concatenate([-t2, t1], axis=-1)

    q = q * jnp.cos(freqs) + rot_half(q) * jnp.sin(freqs)
    k = k * jnp.cos(freqs) + rot_half(k) * jnp.sin(freqs)

    k = jnp.repeat(k, g, axis=1)   # 'b h n d -> b (h g) n d'
    v = jnp.repeat(v, g, axis=1)

    dots = jnp.einsum("bhid,bhjd->bhij", q, k) * scale
    attn = jax.nn.softmax(dots, axis=-1)
    out = jnp.einsum("bhij,bhjd->bhid", attn, v)
    out = out.transpose(0, 2, 1, 3).reshape(b * n, heads * dim_head)
    return (out @ wo + bo).reshape(b, n, dim)


# ----------------------------------- main ------------------------------------- #

if __name__ == "__main__":
    b, n, dim = 2, 8, 32
    heads, dim_head, kv_heads = 8, 16, 4
    inner_dim = heads * dim_head

    key = jax.random.PRNGKey(0)
    kx, kq, kkv, kwo, kbo = jax.random.split(key, 5)

    x = jax.random.normal(kx, (b, n, dim), dtype=jnp.float32)
    # deterministic synthetic parameters (torch Linear weights stored as (in, out))
    wq = jax.random.normal(kq, (dim, inner_dim), dtype=jnp.float32) * 0.05
    wkv = jax.random.normal(kkv, (dim, dim_head * kv_heads * 2), dtype=jnp.float32) * 0.05
    wo = jax.random.normal(kwo, (inner_dim, dim), dtype=jnp.float32) * 0.05
    bo = jax.random.normal(kbo, (1, dim), dtype=jnp.float32) * 0.05

    out = gqa_forward(x, wq, wkv, wo, bo,
                      heads=heads, kv_heads=kv_heads, dim_head=dim_head)
    out = jax.block_until_ready(out)

    ref = gqa_reference(x, wq, wkv, wo, bo,
                        heads=heads, kv_heads=kv_heads, dim_head=dim_head)
    assert out.shape == (b, n, dim)
    assert np.allclose(np.asarray(out), np.asarray(ref), atol=3e-2, rtol=3e-2)

    print("KERNEL_OK")
</pallas_src>

<mosaic_0001>
module attributes {stable_mosaic.version = 11 : i64} {
  func.func @_matmul_kernel(%arg0: i32, %arg1: i32, %arg2: i32, %arg3: memref<16x32xbf16, #tpu.memory_space<vmem>>, %arg4: memref<32x128xbf16, #tpu.memory_space<vmem>>, %arg5: memref<16x128xbf16, #tpu.memory_space<vmem>>, %arg6: memref<16x128xf32, #tpu.memory_space<vmem>>) attributes {dimension_semantics = [#tpu.dimension_semantics<parallel>, #tpu.dimension_semantics<parallel>, #tpu.dimension_semantics<arbitrary>], iteration_bounds = array<i64: 1, 1, 1>, scalar_prefetch = 0 : i64, scratch_operands = 1 : i64, tpu.core_type = #tpu.core_type<tc>, window_params = [{transform_indices = @transform_0, window_bounds = array<i64: 16, 32>}, {transform_indices = @transform_1, window_bounds = array<i64: 32, 128>}, {transform_indices = @transform_2, window_bounds = array<i64: 16, 128>}]} {
    %c0_i32 = arith.constant 0 : i32
    %0 = arith.cmpi eq, %arg2, %c0_i32 : i32
    %1 = arith.extui %0 : i1 to i32
    %c0_i32_0 = arith.constant 0 : i32
    %2 = arith.cmpi ne, %1, %c0_i32_0 : i32
    scf.if %2 {
      %cst_10 = arith.constant 0.000000e+00 : f32
      %12 = vector.broadcast %cst_10 : f32 to vector<16x128xf32>
      %c0_11 = arith.constant 0 : index
      %c0_12 = arith.constant 0 : index
      %13 = vector.load %arg6[%c0_11, %c0_12] : memref<16x128xf32, #tpu.memory_space<vmem>>, vector<16x128xf32>
      tpu.vector_store %arg6[%c0_11, %c0_12], %12 {strides = array<i32>} : memref<16x128xf32, #tpu.memory_space<vmem>>, vector<16x128xf32>,
    } else {
    }
    %c0 = arith.constant 0 : index
    %c0_1 = arith.constant 0 : index
    %3 = vector.load %arg6[%c0, %c0_1] : memref<16x128xf32, #tpu.memory_space<vmem>>, vector<16x128xf32>
    %c0_2 = arith.constant 0 : index
    %c0_3 = arith.constant 0 : index
    %4 = vector.load %arg3[%c0_2, %c0_3] : memref<16x32xbf16, #tpu.memory_space<vmem>>, vector<16x32xbf16>
    %c0_4 = arith.constant 0 : index
    %c0_5 = arith.constant 0 : index
    %5 = vector.load %arg4[%c0_4, %c0_5] : memref<32x128xbf16, #tpu.memory_space<vmem>>, vector<32x128xbf16>
    %cst = arith.constant dense<0.000000e+00> : vector<16x128xf32>
    %6 = tpu.matmul %4, %5, %cst {dimension_numbers = #tpu.dot_dimension_numbers<[1], [0], [0], [1], [0, 0, 1, 1], [], []>} : vector<16x32xbf16>, vector<32x128xbf16>, vector<16x128xf32> -> vector<16x128xf32>
    %7 = arith.addf %3, %6 : vector<16x128xf32>
    %c0_6 = arith.constant 0 : index
    %c0_7 = arith.constant 0 : index
    %8 = vector.load %arg6[%c0_6, %c0_7] : memref<16x128xf32, #tpu.memory_space<vmem>>, vector<16x128xf32>
    tpu.vector_store %arg6[%c0_6, %c0_7], %7 {strides = array<i32>} : memref<16x128xf32, #tpu.memory_space<vmem>>, vector<16x128xf32>,
    %c0_i32_8 = arith.constant 0 : i32
    %9 = arith.cmpi eq, %arg2, %c0_i32_8 : i32
    %10 = arith.extui %9 : i1 to i32
    %c0_i32_9 = arith.constant 0 : i32
    %11 = arith.cmpi ne, %10, %c0_i32_9 : i32
    scf.if %11 {
      %c0_10 = arith.constant 0 : index
      %c0_11 = arith.constant 0 : index
      %12 = vector.load %arg6[%c0_10, %c0_11] : memref<16x128xf32, #tpu.memory_space<vmem>>, vector<16x128xf32>
      %13 = arith.truncf %12 : vector<16x128xf32> to vector<16x128xbf16>
      %c0_12 = arith.constant 0 : index
      %c0_13 = arith.constant 0 : index
      %14 = vector.load %arg5[%c0_12, %c0_13] : memref<16x128xbf16, #tpu.memory_space<vmem>>, vector<16x128xbf16>
      tpu.vector_store %arg5[%c0_12, %c0_13], %13 {strides = array<i32>} : memref<16x128xbf16, #tpu.memory_space<vmem>>, vector<16x128xbf16>,
    } else {
    }
    return
  }
  func.func @transform_0(%arg0: i32, %arg1: i32, %arg2: i32) -> (i32, i32) {
    %c0_i32 = arith.constant 0 : i32
    return %arg0, %arg2 : i32, i32
  }
  func.func @transform_1(%arg0: i32, %arg1: i32, %arg2: i32) -> (i32, i32) {
    %c0_i32 = arith.constant 0 : i32
    return %arg2, %arg1 : i32, i32
  }
  func.func @transform_2(%arg0: i32, %arg1: i32, %arg2: i32) -> (i32, i32) {
    %c0_i32 = arith.constant 0 : i32
    return %arg0, %arg1 : i32, i32
  }
}

module attributes {stable_mosaic.version = 11 : i64} {
  func.func @_flash_gqa_kernel(%arg0: i32, %arg1: i32, %arg2: i32, %arg3: i32, %arg4: memref<1x1x16x16xbf16, #tpu.memory_space<vmem>>, %arg5: memref<1x1x8x16xbf16, #tpu.memory_space<vmem>>, %arg6: memref<1x1x8x16xbf16, #tpu.memory_space<vmem>>, %arg7: memref<16x16xf32, #tpu.memory_space<vmem>>, %arg8: memref<16x16xf32, #tpu.memory_space<vmem>>, %arg9: memref<8x16xf32, #tpu.memory_space<vmem>>, %arg10: memref<8x16xf32, #tpu.memory_space<vmem>>, %arg11: memref<1x1x16x16xbf16, #tpu.memory_space<vmem>>, %arg12: memref<16x16xbf16, #tpu.memory_space<vmem>>, %arg13: memref<16x1xf32, #tpu.memory_space<vmem>>, %arg14: memref<16x1xf32, #tpu.memory_space<vmem>>, %arg15: memref<16x16xf32, #tpu.memory_space<vmem>>) attributes {dimension_semantics = [#tpu.dimension_semantics<parallel>, #tpu.dimension_semantics<parallel>, #tpu.dimension_semantics<parallel>, #tpu.dimension_semantics<arbitrary>], iteration_bounds = array<i64: 2, 4, 1, 1>, scalar_prefetch = 0 : i64, scratch_operands = 4 : i64, tpu.core_type = #tpu.core_type<tc>, window_params = [{transform_indices = @transform_0, window_bounds = array<i64: 1, 1, 16, 16>}, {transform_indices = @transform_1, window_bounds = array<i64: 1, 1, 8, 16>}, {transform_indices = @transform_2, window_bounds = array<i64: 1, 1, 8, 16>}, {transform_indices = @transform_3, window_bounds = array<i64: 16, 16>}, {transform_indices = @transform_4, window_bounds = array<i64: 16, 16>}, {transform_indices = @transform_5, window_bounds = array<i64: 8, 16>}, {transform_indices = @transform_6, window_bounds = array<i64: 8, 16>}, {transform_indices = @transform_7, window_bounds = array<i64: 1, 1, 16, 16>}]} {
    %c0_i32 = arith.constant 0 : i32
    %0 = arith.cmpi eq, %arg3, %c0_i32 : i32
    %1 = arith.extui %0 : i1 to i32
    %c0_i32_0 = arith.constant 0 : i32
    %2 = arith.cmpi ne, %1, %c0_i32_0 : i32
    scf.if %2 {
      %c0_31 = arith.constant 0 : index
      %c0_32 = arith.constant 0 : index
      %c0_33 = arith.constant 0 : index
      %c0_34 = arith.constant 0 : index
      %45 = vector.load %arg4[%c0_31, %c0_32, %c0_33, %c0_34] : memref<1x1x16x16xbf16, #tpu.memory_space<vmem>>, vector<1x1x16x16xbf16>
      %46 = vector.shape_cast %45 : vector<1x1x16x16xbf16> to vector<16x16xbf16>
      %47 = arith.extf %46 : vector<16x16xbf16> to vector<16x16xf32>
      %48 = vector.extract_strided_slice %47 {offsets = [0, 8], sizes = [16, 8], strides = [1, 1]} : vector<16x16xf32> to vector<16x8xf32>
      %49 = vector.extract_strided_slice %47 {offsets = [0, 0], sizes = [16, 8], strides = [1, 1]} : vector<16x16xf32> to vector<16x8xf32>
      %50 = tpu.concatenate %48, %49 in 1 : vector<16x8xf32>, vector<16x8xf32> -> vector<16x16xf32>
      %c0_35 = arith.constant 0 : index
      %c0_36 = arith.constant 0 : index
      %51 = vector.load %arg7[%c0_35, %c0_36] : memref<16x16xf32, #tpu.memory_space<vmem>>, vector<16x16xf32>
      %52 = arith.mulf %47, %51 : vector<16x16xf32>
      %c0_37 = arith.constant 0 : index
      %c0_38 = arith.constant 0 : index
      %53 = vector.load %arg8[%c0_37, %c0_38] : memref<16x16xf32, #tpu.memory_space<vmem>>, vector<16x16xf32>
      %54 = arith.mulf %50, %53 : vector<16x16xf32>
      %55 = arith.addf %52, %54 : vector<16x16xf32>
      %56 = arith.truncf %55 : vector<16x16xf32> to vector<16x16xbf16>
      %c0_39 = arith.constant 0 : index
      %c0_40 = arith.constant 0 : index
      %57 = vector.load %arg12[%c0_39, %c0_40] : memref<16x16xbf16, #tpu.memory_space<vmem>>, vector<16x16xbf16>
      tpu.vector_store %arg12[%c0_39, %c0_40], %56 {strides = array<i32>} : memref<16x16xbf16, #tpu.memory_space<vmem>>, vector<16x16xbf16>,
      %cst_41 = arith.constant 0xFF800000 : f32
      %58 = vector.broadcast %cst_41 : f32 to vector<16x1xf32>
      %c0_42 = arith.constant 0 : index
      %c0_43 = arith.constant 0 : index
      %59 = vector.load %arg13[%c0_42, %c0_43] : memref<16x1xf32, #tpu.memory_space<vmem>>, vector<16x1xf32>
      tpu.vector_store %arg13[%c0_42, %c0_43], %58 {strides = array<i32>} : memref<16x1xf32, #tpu.memory_space<vmem>>, vector<16x1xf32>,
      %cst_44 = arith.constant 0.000000e+00 : f32
      %60 = vector.broadcast %cst_44 : f32 to vector<16x1xf32>
      %c0_45 = arith.constant 0 : index
      %c0_46 = arith.constant 0 : index
      %61 = vector.load %arg14[%c0_45, %c0_46] : memref<16x1xf32, #tpu.memory_space<vmem>>, vector<16x1xf32>
      tpu.vector_store %arg14[%c0_45, %c0_46], %60 {strides = array<i32>} : memref<16x1xf32, #tpu.memory_space<vmem>>, vector<16x1xf32>,
      %cst_47 = arith.constant 0.000000e+00 : f32
      %62 = vector.broadcast %cst_47 : f32 to vector<16x16xf32>
      %c0_48 = arith.constant 0 : index
      %c0_49 = arith.constant 0 : index
      %63 = vector.load %arg15[%c0_48, %c0_49] : memref<16x16xf32, #tpu.memory_space<vmem>>, vector<16x16xf32>
      tpu.vector_store %arg15[%c0_48, %c0_49], %62 {strides = array<i32>} : memref<16x16xf32, #tpu.memory_space<vmem>>, vector<16x16xf32>,
    } else {
    }
    %c0 = arith.constant 0 : index
    %c0_1 = arith.constant 0 : index
    %c0_2 = arith.constant 0 : index
    %c0_3 = arith.constant 0 : index
    %3 = vector.load %arg5[%c0, %c0_1, %c0_2, %c0_3] : memref<1x1x8x16xbf16, #tpu.memory_space<vmem>>, vector<1x1x8x16xbf16>
    %4 = vector.shape_cast %3 : vector<1x1x8x16xbf16> to vector<8x16xbf16>
    %5 = arith.extf %4 : vector<8x16xbf16> to vector<8x16xf32>
    %6 = vector.extract_strided_slice %5 {offsets = [0, 8], sizes = [8, 8], strides = [1, 1]} : vector<8x16xf32> to vector<8x8xf32>
    %7 = vector.extract_strided_slice %5 {offsets = [0, 0], sizes = [8, 8], strides = [1, 1]} : vector<8x16xf32> to vector<8x8xf32>
    %8 = tpu.concatenate %6, %7 in 1 : vector<8x8xf32>, vector<8x8xf32> -> vector<8x16xf32>
    %c0_4 = arith.constant 0 : index
    %c0_5 = arith.constant 0 : index
    %9 = vector.load %arg9[%c0_4, %c0_5] : memref<8x16xf32, #tpu.memory_space<vmem>>, vector<8x16xf32>
    %10 = arith.mulf %5, %9 : vector<8x16xf32>
    %c0_6 = arith.constant 0 : index
    %c0_7 = arith.constant 0 : index
    %11 = vector.load %arg10[%c0_6, %c0_7] : memref<8x16xf32, #tpu.memory_space<vmem>>, vector<8x16xf32>
    %12 = arith.mulf %8, %11 : vector<8x16xf32>
    %13 = arith.addf %10, %12 : vector<8x16xf32>
    %14 = arith.truncf %13 : vector<8x16xf32> to vector<8x16xbf16>
    %c0_8 = arith.constant 0 : index
    %c0_9 = arith.constant 0 : index
    %15 = vector.load %arg12[%c0_8, %c0_9] : memref<16x16xbf16, #tpu.memory_space<vmem>>, vector<16x16xbf16>
    %cst = arith.constant dense<0.000000e+00> : vector<16x8xf32>
    %16 = tpu.matmul %15, %14, %cst {dimension_numbers = #tpu.dot_dimension_numbers<[1], [1], [0], [0], [0, 0, 1, 0], [], []>} : vector<16x16xbf16>, vector<8x16xbf16>, vector<16x8xf32> -> vector<16x8xf32>
    %c0_10 = arith.constant 0 : index
    %c0_11 = arith.constant 0 : index
    %17 = vector.load %arg13[%c0_10, %c0_11] : memref<16x1xf32, #tpu.memory_space<vmem>>, vector<16x1xf32>
    %cst_12 = arith.constant dense<0xFF800000> : vector<16xf32>
    %18 = vector.multi_reduction <maximumf>, %16, %cst_12 [1] : vector<16x8xf32> to vector<16xf32>
    %19 = vector.shape_cast %18 : vector<16xf32> to vector<16x1xf32>
    %20 = arith.maximumf %17, %19 : vector<16x1xf32>
    %21 = arith.subf %17, %20 : vector<16x1xf32>
    %22 = math.exp %21 : vector<16x1xf32>
    %23 = vector.broadcast %20 : vector<16x1xf32> to vector<16x8xf32>
    %24 = arith.subf %16, %23 : vector<16x8xf32>
    %25 = math.exp %24 : vector<16x8xf32>
    %c0_13 = arith.constant 0 : index
    %c0_14 = arith.constant 0 : index
    %26 = vector.load %arg14[%c0_13, %c0_14] : memref<16x1xf32, #tpu.memory_space<vmem>>, vector<16x1xf32>
    %27 = arith.mulf %22, %26 : vector<16x1xf32>
    %cst_15 = arith.constant dense<0.000000e+00> : vector<16xf32>
    %28 = vector.multi_reduction <add>, %25, %cst_15 [1] : vector<16x8xf32> to vector<16xf32>
    %29 = vector.shape_cast %28 : vector<16xf32> to vector<16x1xf32>
    %30 = arith.addf %27, %29 : vector<16x1xf32>
    %c0_16 = arith.constant 0 : index
    %c0_17 = arith.constant 0 : index
    %31 = vector.load %arg14[%c0_16, %c0_17] : memref<16x1xf32, #tpu.memory_space<vmem>>, vector<16x1xf32>
    tpu.vector_store %arg14[%c0_16, %c0_17], %30 {strides = array<i32>} : memref<16x1xf32, #tpu.memory_space<vmem>>, vector<16x1xf32>,
    %c0_18 = arith.constant 0 : index
    %c0_19 = arith.constant 0 : index
    %32 = vector.load %arg15[%c0_18, %c0_19] : memref<16x16xf32, #tpu.memory_space<vmem>>, vector<16x16xf32>
    %33 = vector.broadcast %22 : vector<16x1xf32> to vector<16x16xf32>
    %34 = arith.mulf %33, %32 : vector<16x16xf32>
    %35 = arith.truncf %25 : vector<16x8xf32> to vector<16x8xbf16>
    %c0_20 = arith.constant 0 : index
    %c0_21 = arith.constant 0 : index
    %c0_22 = arith.constant 0 : index
    %c0_23 = arith.constant 0 : index
    %36 = vector.load %arg6[%c0_20, %c0_21, %c0_22, %c0_23] : memref<1x1x8x16xbf16, #tpu.memory_space<vmem>>, vector<1x1x8x16xbf16>
    %37 = vector.shape_cast %36 : vector<1x1x8x16xbf16> to vector<8x16xbf16>
    %cst_24 = arith.constant dense<0.000000e+00> : vector<16x16xf32>
    %38 = tpu.matmul %35, %37, %cst_24 {dimension_numbers = #tpu.dot_dimension_numbers<[1], [0], [0], [1], [0, 0, 1, 1], [], []>} : vector<16x8xbf16>, vector<8x16xbf16>, vector<16x16xf32> -> vector<16x16xf32>
    %39 = arith.addf %34, %38 : vector<16x16xf32>
    %c0_25 = arith.constant 0 : index
    %c0_26 = arith.constant 0 : index
    %40 = vector.load %arg15[%c0_25, %c0_26] : memref<16x16xf32, #tpu.memory_space<vmem>>, vector<16x16xf32>
    tpu.vector_store %arg15[%c0_25, %c0_26], %39 {strides = array<i32>} : memref<16x16xf32, #tpu.memory_space<vmem>>, vector<16x16xf32>,
    %c0_27 = arith.constant 0 : index
    %c0_28 = arith.constant 0 : index
    %41 = vector.load %arg13[%c0_27, %c0_28] : memref<16x1xf32, #tpu.memory_space<vmem>>, vector<16x1xf32>
    tpu.vector_store %arg13[%c0_27, %c0_28], %20 {strides = array<i32>} : memref<16x1xf32, #tpu.memory_space<vmem>>, vector<16x1xf32>,
    %c0_i32_29 = arith.constant 0 : i32
    %42 = arith.cmpi eq, %arg3, %c0_i32_29 : i32
    %43 = arith.extui %42 : i1 to i32
    %c0_i32_30 = arith.constant 0 : i32
    %44 = arith.cmpi ne, %43, %c0_i32_30 : i32
    scf.if %44 {
      %c0_31 = arith.constant 0 : index
      %c0_32 = arith.constant 0 : index
      %45 = vector.load %arg15[%c0_31, %c0_32] : memref<16x16xf32, #tpu.memory_space<vmem>>, vector<16x16xf32>
      %c0_33 = arith.constant 0 : index
      %c0_34 = arith.constant 0 : index
      %46 = vector.load %arg14[%c0_33, %c0_34] : memref<16x1xf32, #tpu.memory_space<vmem>>, vector<16x1xf32>
      %47 = tpu.reciprocal %46 {approx = true} : vector<16x1xf32> -> vector<16x1xf32>
      %48 = vector.broadcast %47 : vector<16x1xf32> to vector<16x16xf32>
      %49 = arith.mulf %45, %48 : vector<16x16xf32>
      %50 = arith.truncf %49 : vector<16x16xf32> to vector<16x16xbf16>
      %c0_35 = arith.constant 0 : index
      %c0_36 = arith.constant 0 : index
      %c0_37 = arith.constant 0 : index
      %c0_38 = arith.constant 0 : index
      %51 = vector.load %arg11[%c0_35, %c0_36, %c0_37, %c0_38] : memref<1x1x16x16xbf16, #tpu.memory_space<vmem>>, vector<1x1x16x16xbf16>
      %52 = vector.shape_cast %51 : vector<1x1x16x16xbf16> to vector<16x16xbf16>
      %53 = vector.shape_cast %50 : vector<16x16xbf16> to vector<1x1x16x16xbf16>
      tpu.vector_store %arg11[%c0_35, %c0_36, %c0_37, %c0_38], %53 {strides = array<i32>} : memref<1x1x16x16xbf16, #tpu.memory_space<vmem>>, vector<1x1x16x16xbf16>,
    } else {
    }
    return
  }
  func.func @transform_0(%arg0: i32, %arg1: i32, %arg2: i32, %arg3: i32) -> (i32, i32, i32, i32) {
    %c0_i32 = arith.constant 0 : i32
    %c0_i32_0 = arith.constant 0 : i32
    return %arg0, %arg1, %arg2, %c0_i32 : i32, i32, i32, i32
  }
  func.func @transform_1(%arg0: i32, %arg1: i32, %arg2: i32, %arg3: i32) -> (i32, i32, i32, i32) {
    %c0_i32 = arith.constant 0 : i32
    %c0_i32_0 = arith.constant 0 : i32
    return %arg0, %arg1, %arg3, %c0_i32 : i32, i32, i32, i32
  }
  func.func @transform_2(%arg0: i32, %arg1: i32, %arg2: i32, %arg3: i32) -> (i32, i32, i32, i32) {
    %c0_i32 = arith.constant 0 : i32
    %c0_i32_0 = arith.constant 0 : i32
    return %arg0, %arg1, %arg3, %c0_i32 : i32, i32, i32, i32
  }
  func.func @transform_3(%arg0: i32, %arg1: i32, %arg2: i32, %arg3: i32) -> (i32, i32) {
    %c0_i32 = arith.constant 0 : i32
    %c0_i32_0 = arith.constant 0 : i32
    return %arg2, %c0_i32 : i32, i32
  }
  func.func @transform_4(%arg0: i32, %arg1: i32, %arg2: i32, %arg3: i32) -> (i32, i32) {
    %c0_i32 = arith.constant 0 : i32
    %c0_i32_0 = arith.constant 0 : i32
    return %arg2, %c0_i32 : i32, i32
  }
  func.func @transform_5(%arg0: i32, %arg1: i32, %arg2: i32, %arg3: i32) -> (i32, i32) {
    %c0_i32 = arith.constant 0 : i32
    %c0_i32_0 = arith.constant 0 : i32
    return %arg3, %c0_i32 : i32, i32
  }
  func.func @transform_6(%arg0: i32, %arg1: i32, %arg2: i32, %arg3: i32) -> (i32, i32) {
    %c0_i32 = arith.constant 0 : i32
    %c0_i32_0 = arith.constant 0 : i32
    return %arg3, %c0_i32 : i32, i32
  }
  func.func @transform_7(%arg0: i32, %arg1: i32, %arg2: i32, %arg3: i32) -> (i32, i32, i32, i32) {
    %c0_i32 = arith.constant 0 : i32
    %c0_i32_0 = arith.constant 0 : i32
    return %arg0, %arg1, %arg2, %c0_i32 : i32, i32, i32, i32
  }
}

module attributes {stable_mosaic.version = 11 : i64} {
  func.func @_matmul_bias_kernel(%arg0: i32, %arg1: i32, %arg2: i32, %arg3: memref<16x128xbf16, #tpu.memory_space<vmem>>, %arg4: memref<128x32xbf16, #tpu.memory_space<vmem>>, %arg5: memref<1x32xf32, #tpu.memory_space<vmem>>, %arg6: memref<16x32xf32, #tpu.memory_space<vmem>>, %arg7: memref<16x32xf32, #tpu.memory_space<vmem>>) attributes {dimension_semantics = [#tpu.dimension_semantics<parallel>, #tpu.dimension_semantics<parallel>, #tpu.dimension_semantics<arbitrary>], iteration_bounds = array<i64: 1, 1, 1>, scalar_prefetch = 0 : i64, scratch_operands = 1 : i64, tpu.core_type = #tpu.core_type<tc>, window_params = [{transform_indices = @transform_0, window_bounds = array<i64: 16, 128>}, {transform_indices = @transform_1, window_bounds = array<i64: 128, 32>}, {transform_indices = @transform_2, window_bounds = array<i64: 1, 32>}, {transform_indices = @transform_3, window_bounds = array<i64: 16, 32>}]} {
    %c0_i32 = arith.constant 0 : i32
    %0 = arith.cmpi eq, %arg2, %c0_i32 : i32
    %1 = arith.extui %0 : i1 to i32
    %c0_i32_0 = arith.constant 0 : i32
    %2 = arith.cmpi ne, %1, %c0_i32_0 : i32
    scf.if %2 {
      %cst_10 = arith.constant 0.000000e+00 : f32
      %12 = vector.broadcast %cst_10 : f32 to vector<16x32xf32>
      %c0_11 = arith.constant 0 : index
      %c0_12 = arith.constant 0 : index
      %13 = vector.load %arg7[%c0_11, %c0_12] : memref<16x32xf32, #tpu.memory_space<vmem>>, vector<16x32xf32>
      tpu.vector_store %arg7[%c0_11, %c0_12], %12 {strides = array<i32>} : memref<16x32xf32, #tpu.memory_space<vmem>>, vector<16x32xf32>,
    } else {
    }
    %c0 = arith.constant 0 : index
    %c0_1 = arith.constant 0 : index
    %3 = vector.load %arg7[%c0, %c0_1] : memref<16x32xf32, #tpu.memory_space<vmem>>, vector<16x32xf32>
    %c0_2 = arith.constant 0 : index
    %c0_3 = arith.constant 0 : index
    %4 = vector.load %arg3[%c0_2, %c0_3] : memref<16x128xbf16, #tpu.memory_space<vmem>>, vector<16x128xbf16>
    %c0_4 = arith.constant 0 : index
    %c0_5 = arith.constant 0 : index
    %5 = vector.load %arg4[%c0_4, %c0_5] : memref<128x32xbf16, #tpu.memory_space<vmem>>, vector<128x32xbf16>
    %cst = arith.constant dense<0.000000e+00> : vector<16x32xf32>
    %6 = tpu.matmul %4, %5, %cst {dimension_numbers = #tpu.dot_dimension_numbers<[1], [0], [0], [1], [0, 0, 1, 1], [], []>} : vector<16x128xbf16>, vector<128x32xbf16>, vector<16x32xf32> -> vector<16x32xf32>
    %7 = arith.addf %3, %6 : vector<16x32xf32>
    %c0_6 = arith.constant 0 : index
    %c0_7 = arith.constant 0 : index
    %8 = vector.load %arg7[%c0_6, %c0_7] : memref<16x32xf32, #tpu.memory_space<vmem>>, vector<16x32xf32>
    tpu.vector_store %arg7[%c0_6, %c0_7], %7 {strides = array<i32>} : memref<16x32xf32, #tpu.memory_space<vmem>>, vector<16x32xf32>,
    %c0_i32_8 = arith.constant 0 : i32
    %9 = arith.cmpi eq, %arg2, %c0_i32_8 : i32
    %10 = arith.extui %9 : i1 to i32
    %c0_i32_9 = arith.constant 0 : i32
    %11 = arith.cmpi ne, %10, %c0_i32_9 : i32
    scf.if %11 {
      %c0_10 = arith.constant 0 : index
      %c0_11 = arith.constant 0 : index
      %12 = vector.load %arg7[%c0_10, %c0_11] : memref<16x32xf32, #tpu.memory_space<vmem>>, vector<16x32xf32>
      %c0_12 = arith.constant 0 : index
      %c0_13 = arith.constant 0 : index
      %13 = vector.load %arg5[%c0_12, %c0_13] : memref<1x32xf32, #tpu.memory_space<vmem>>, vector<1x32xf32>
      %14 = vector.broadcast %13 : vector<1x32xf32> to vector<16x32xf32>
      %15 = arith.addf %12, %14 : vector<16x32xf32>
      %c0_14 = arith.constant 0 : index
      %c0_15 = arith.constant 0 : index
      %16 = vector.load %arg6[%c0_14, %c0_15] : memref<16x32xf32, #tpu.memory_space<vmem>>, vector<16x32xf32>
      tpu.vector_store %arg6[%c0_14, %c0_15], %15 {strides = array<i32>} : memref<16x32xf32, #tpu.memory_space<vmem>>, vector<16x32xf32>,
    } else {
    }
    return
  }
  func.func @transform_0(%arg0: i32, %arg1: i32, %arg2: i32) -> (i32, i32) {
    %c0_i32 = arith.constant 0 : i32
    return %arg0, %arg2 : i32, i32
  }
  func.func @transform_1(%arg0: i32, %arg1: i32, %arg2: i32) -> (i32, i32) {
    %c0_i32 = arith.constant 0 : i32
    return %arg2, %arg1 : i32, i32
  }
  func.func @transform_2(%arg0: i32, %arg1: i32, %arg2: i32) -> (i32, i32) {
    %c0_i32 = arith.constant 0 : i32
    %c0_i32_0 = arith.constant 0 : i32
    return %c0_i32, %arg1 : i32, i32
  }
  func.func @transform_3(%arg0: i32, %arg1: i32, %arg2: i32) -> (i32, i32) {
    %c0_i32 = arith.constant 0 : i32
    return %arg0, %arg1 : i32, i32
  }
}

</mosaic_0001>

<bundles_post_ra>
// kernel: gqa_forward.5
= control target key start
LH: loop header
LB: loop body
LE: loop exit
PB: predicated region body
PF: predicated region fallthrough
CT: control target
= control target key end

     0   :  { %vm43_vm0 = vcmask 261120   ;;  %s126_s1 = inlined_call_operand.vmem [shape: bf16[32,128], index: 1, kind: input, shape index: {}]   ;;  %s127_s0 = inlined_call_operand.vmem [shape: bf16[16,32], index: 0, kind: input, shape index: {}]   ;;  %s128_s2 = inlined_call_operand.vmem [shape: bf16[16,128], index: 2, kind: output, shape index: {}]  }
   0x1   :  { %v93_v0 = vld [vmem:[%s126_s1 + $0x8] sm:$0xff]  ;;  %v92_v1 = vld [vmem:[%s126_s1] sm:$0xff] }
   0x2   :  { %53 = vmatpush.bf16.msra.mxu0 %v93_v0  ;;  %v91_v2 = vld [vmem:[%s127_s0] sm:$0xff] }
   0x6   :  { %54 = vmatpush.bf16.msra.mxu0 %v92_v1 }
   0x9   :  { %90 = vmatmul.msk.bf16.vlgmr.msra.gmra.mxu0 %vm43_vm0, %v91_v2 }
  0x86   :  { %v56_v3 = vpop.f32.mrf.mxu0 }
  0x8e   :  { %v58_v4 = vpop.f32.mrf.mxu0 }
  0x8f   :  { %v97_v5 = vpack.c.bf16 %v58_v4, %v56_v3 }
  0x91   :  { %98 = vst [vmem:[%s128_s2] sm:$0xff] %v97_v5  }

// kernel: gqa_forward.6
= control target key start
LH: loop header
LB: loop body
LE: loop exit
PB: predicated region body
PF: predicated region fallthrough
CT: control target
= control target key end

     0   :  { %s1135_s24 = smov 0   ;;  %s1137_s25 = smov 0   ;;  %s1250_s0 = inlined_call_operand.vmem [shape: bf16[2,4,16,16], index: 0, kind: input, shape index: {}]   ;;  %s1251_s1 = inlined_call_operand.vmem [shape: bf16[2,4,8,16], index: 1, kind: input, shape index: {}]   ;;  %s1252_s2 = inlined_call_operand.vmem [shape: bf16[2,4,8,16], index: 2, kind: input, shape index: {}]   ;;  %s1253_s3 = inlined_call_operand.vmem [shape: f32[16,16], index: 3, kind: input, shape index: {}]   ;;  %s1254_s4 = inlined_call_operand.vmem [shape: f32[16,16], index: 4, kind: input, shape index: {}]   ;;  %s1255_s5 = inlined_call_operand.vmem [shape: f32[8,16], index: 5, kind: input, shape index: {}]   ;;  %s1256_s6 = inlined_call_operand.vmem [shape: f32[8,16], index: 6, kind: input, shape index: {}]   ;;  %s1257_s7 = inlined_call_operand.vmem [shape: bf16[2,4,16,16], index: 7, kind: output, shape index: {}]  }
   0x1   :  { %s1139_s26 = smov 0   ;;  %s1141_s27 = smov 0  }
   0x2   :  { %s1143_s28 = smov 0  }
   0x3 LB: > { %s39_s29 = sadd.s32 1, %s1080_s26  ;;  %s43_s30 = sadd.s32 1, %s1084_s27  ;;  %s1088_s28 = sphi %s1143_s28, %s17_s28   ;;  %s1084_s27 = sphi %s1141_s27, %s1261_s27   ;;  %s1080_s26 = sphi %s1139_s26, %s1260_s26   ;;  %s1076_s25 = sphi %s1137_s25, %s1259_s25   ;;  %s1072_s24 = sphi %s1135_s24, %s1258_s24  }
   0x4   : > { %p41_p0 = scmp.ge.s32.totalorder %s39_s29, 4  ;;  %p956_p1 = scmp.ge.s32.totalorder %s1088_s28, 1 }
   0x5   : > { %p360_p2 = scmp.lt.s32.totalorder %s1088_s28, 9 }
   0x6   : > { %s1263_s29 = smov (%p41_p0, %s39_s29), 0  ;;  %s1265_s30 = smov (!%p41_p0, %s43_s30), %s1084_s27 }
   0x7   : > { %p361_p3 = pnand %p956_p1, %p360_p2  ;;  %p45_p4 = scmp.ge.s32.totalorder %s1265_s30, 2 }
   0x8   : > { %p449_p5 = scmp.lt.s32.totalorder (!%p361_p3), %s1076_s25, 1  ;;  %p451_p6 = scmp.lt.s32.totalorder (!%p361_p3), %s1072_s24, 3 }
   0x9   : > { %s1267_s30 = smov (%p45_p4, %s1265_s30), 0  ;;  %364 = sbr.rel (%p361_p3) target bundleno = 799 (0x31f), region = 48 }
   0xa   : > { %s1090_s21 = smov (!%p361_p3), 120   ;;  %s1091_s22 = smov (!%p361_p3), 8  }
   0xe   : > { %s1269_s25 = smov (!%p449_p5, %s1076_s25), 1  ;;  %s1271_s24 = smov (!%p451_p6, %s1072_s24), 3  ;;  %vm564_vm0 = vcmask 130048   ;;  %v1092_v6 = vmov 0.0   ;;  %v578_v9 = vld [vmem:[%s1255_s5] sm:$0xff]  ;;  %vm541_vm1 = vcmask 64512  }
   0xf   : > { %s960_s8 = sshll.u32 %s1269_s25, 2  ;;  %s958_s9 = sshll.u32 %s1269_s25, 3  ;;  %565 = vst.msk [vmem:[#allocation5] sm:$0xff] %vm564_vm0, %v1092_v6  ;;  %v580_v10 = vld [vmem:[%s1256_s6] sm:$0xff]  ;;  %v545_v15 = vld [vmem:[%s1253_s3 + $0x8] sm:$0xff]  ;;  %vm556_vm2 = vcmask 125952  }
  0x10   : > { %s1165_s10 = sadd.s32 %s960_s8, %s1271_s24  ;;  %s957_s11 = sshll.u32 %s1271_s24, 1  ;;  %566 = vst.msk [vmem:[#allocation5 + $0x8] sm:$0xff] %vm564_vm0, %v1092_v6  ;;  %v544_v14 = vld [vmem:[%s1253_s3] sm:$0xff]  ;;  %v549_v21 = vld [vmem:[%s1254_s4 + $0x8] sm:$0xff]  ;;  %vm559_vm3 = vcmask 7168   ;;  %v1093_v38 = vmov -inf  }
  0x11   : > { %s961_s12 = sshll.u32 %s1165_s10, 2  ;;  %s1168_s13 = sadd.s32 %s958_s9, %s957_s11  ;;  %v548_v20 = vld [vmem:[%s1254_s4] sm:$0xff]  ;;  %560 = vst.msk [vmem:[#allocation3] sm:$0xff] %vm559_vm3, %v1093_v38  ;;  %v1094_v43 = vmov 0   ;;  %vm678_vm4 = vcmask 1043456  }
  0x12   : > { %s472_s16 = scalar_lea.vmem %s1251_s1, %s961_s12  ;;  %s959_s17 = sshll.u32 %s1168_s13, 2  ;;  %561 = vst.msk [vmem:[#allocation3 + $0x8] sm:$0xff] %vm559_vm3, %v1093_v38  ;;  %1035 = vset.pattern.permute.xlu0 %v1094_v43  ;;  %1036 = vset.pattern.permute.xlu1 %v1094_v43 }
  0x13   : > { %v567_v0 = vld [vmem:[%s472_s16] sm:$0xf]  ;;  %s460_s20 = scalar_lea.vmem %s1250_s0, %s959_s17  ;;  %562 = vst.msk [vmem:[#allocation4] sm:$0xff] %vm559_vm3, %v1092_v6  ;;  %1037 = vset.pattern.permute.xlu2 %v1094_v43  ;;  %s483_s23 = scalar_lea.vmem %s1252_s2, %s961_s12 }
  0x14   : > { %v568_v1 = vunpack.c.l.bf16 %v567_v0  ;;  %v977_v2 = vld [vmem:[%s460_s20] sm:$0xff]   ;;  %563 = vst.msk [vmem:[#allocation4 + $0x8] sm:$0xff] %vm559_vm3, %v1092_v6  ;;  %s516_s24 = scalar_lea.vmem %s1257_s7, %s959_s17 }
  0x15   : > { %v978_v3 = vunpack.c.l.bf16 %v977_v2  ;;  %v979_v4 = vunpack.c.h.bf16 %v977_v2  ;;  %v674_v54 = vld [vmem:[%s483_s23] sm:$0xf] }
  0x16   : > { %570 = vrot.lane.b32.xlu1 %v568_v1, %s1090_s21  ;;  %v579_v12 = vmul.f32 %v578_v9, %v568_v1  ;;  %v680_v55 = vsel %vm678_vm4, %v674_v54, 0 }
  0x17   : > { %v1025_v5 = vpack.i.bf16 %v979_v4, %v978_v3  ;;  %v547_v25 = vmul.f32 %v979_v4, %v545_v15  ;;  %v546_v26 = vmul.f32 %v978_v3, %v544_v14  ;;  %689 = vmatpush.bf16.msra.mxu1 %v680_v55  ;;  %v659_v14 = vld [vmem:[#allocation5] sm:$0xff] }
  0x18   : > { %v612_v44 = vld [vmem:[#allocation3] sm:$0xff] }
  0x19   : > { %1026 = vrot.lane.b32.xlu0 %v1025_v5, %s1090_s21  ;;  %v613_v48 = vld [vmem:[#allocation3 + $0x8] sm:$0xff] }
  0x1b   : > { %v645_v9 = vld [vmem:[#allocation4 + $0x8] sm:$0xff] }
  0x1e   : > { %573 = vrot.lane.b32.xlu1 %v568_v1, %s1091_s22 }
  0x21   : > { %1031 = vrot.lane.b32.xlu0 %v1025_v5, %s1091_s22  ;;  %v644_v5 = vld [vmem:[#allocation4] sm:$0xff] }
  0x88   : > { %v571_v7 = vpop.permute.xlu1 %570 }
  0x8b   : > { %v1027_v8 = vpop.permute.xlu0 %1026 }
  0x8c   : > { %v1029_v17 = vunpack.i.h.bf16 %v1027_v8  ;;  %v1028_v19 = vunpack.i.l.bf16 %v1027_v8 }
  0x90   : > { %v574_v11 = vpop.permute.xlu1 %573 }
  0x91   : > { %v577_v13 = vsel %vm541_vm1, %v571_v7, %v574_v11 }
  0x92   : > { %v581_v16 = vmul.f32 %v580_v10, %v577_v13 }
  0x93   : > { %v1032_v18 = vpop.permute.xlu0 %1031 }
  0x94   : > { %v1034_v22 = vunpack.i.h.bf16 %v1032_v18  ;;  %v1033_v23 = vunpack.i.l.bf16 %v1032_v18  ;;  %v582_v24 = vadd.f32 %v581_v16, %v579_v12 }
  0x96   : > { %v542_v27 = vsel %vm541_vm1, %v1028_v19, %v1033_v23  ;;  %v543_v28 = vsel %vm541_vm1, %v1029_v17, %v1034_v22  ;;  %v583_v29 = vpack.c.bf16 %v582_v24, %v582_v24 }
  0x97   : > { %v550_v30 = vmul.f32 %v548_v20, %v542_v27  ;;  %v551_v31 = vmul.f32 %v549_v21, %v543_v28  ;;  %v660_v21 = vld [vmem:[#allocation5 + $0x8] sm:$0xff] }
  0x98   : > { %v596_v32 = vsel %vm564_vm0, %v583_v29, 0 }
  0x99   : > { %v552_v33 = vadd.f32 %v550_v30, %v546_v26  ;;  %v553_v34 = vadd.f32 %v551_v31, %v547_v25  ;;  %605 = vmatpush.bf16.xpose.msra.mxu0 %v596_v32 }
  0x9b   : > { %v554_v35 = vpack.c.bf16 %v552_v33, %v552_v33  ;;  %v555_v36 = vpack.c.bf16 %v553_v34, %v553_v34 }
  0x9d   : > { %557 = vst.msk [vmem:[#allocation2] sm:$0xf] %vm556_vm2, %v554_v35 }
  0x9e   : > { %558 = vst.msk [vmem:[#allocation2 + $0x4] sm:$0xf] %vm556_vm2, %v555_v36 }
  0xa5   : > { %v975_v37 = vld [vmem:[#allocation2] sm:$0xff] }
  0xa6   : > { %971 = vmatmul.msk.bf16.vlgmr.msra.gmra.mxu0 %vm564_vm0, %v975_v37 }
 0x123   : > { %v607_v39 = vpop.f32.mrf.mxu0 }
 0x124   : > { %v614_v40 = vsel %vm541_vm1, %v607_v39, -inf }
 0x125   : > { %615 = vmax.xlane.f32.xlu2 %v614_v40 }
 0x12b   : > { %v609_v41 = vpop.f32.mrf.mxu0 }
 0x12c   : > { %v617_v42 = vsel %vm541_vm1, %v609_v41, -inf }
 0x12d   : > { %618 = vmax.xlane.f32.xlu2 %v617_v42 }
 0x198   : > { %v616_v45 = vpop.xlane.xlu2 %615 }
 0x199   : > { %v620_v46 = vmax.f32 %v612_v44, %v616_v45 }
 0x19b   : > { %v622_v47 = vsub.f32 %v612_v44, %v620_v46  ;;  %700 = vst.msk [vmem:[#allocation3] sm:$0xff] %vm559_vm3, %v620_v46  ;;  %630 = vperm.xlu0 %1035, %v620_v46  }
 0x19d   : > { %v624_v3 = vmul.f32 1.442695, %v622_v47 }
 0x1a0   : > { %v619_v49 = vpop.xlane.xlu2 %618 }
 0x1a1   : > { %v621_v50 = vmax.f32 %v613_v48, %v619_v49 }
 0x1a3   : > { %v623_v51 = vsub.f32 %v613_v48, %v621_v50  ;;  %701 = vst.msk [vmem:[#allocation3 + $0x8] sm:$0xff] %vm559_vm3, %v621_v50  ;;  %635 = vperm.xlu1 %1036, %v621_v50  }
 0x1a5   : > { %v626_v52 = vmul.f32 1.442695, %v623_v51 }
 0x1a7   : > { %1038 = vpow2.f32 %v626_v52 }
 0x1ad   : > { %v1039_v53 = vpop.eup %1038 }
 0x1ae   : > { %668 = vperm.xlu0 %1035, %v1039_v53   ;;  %v647_v10 = vmul.f32 %v1039_v53, %v645_v9 }
 0x20d   : > { %v631_v56 = vpop.permute.xlu0 %630 }
 0x20e   : > { %v638_v57 = vsub.f32 %v607_v39, %v631_v56 }
 0x210   : > { %v640_v58 = vmul.f32 1.442695, %v638_v57 }
 0x212   : > { %1040 = vpow2.f32 %v640_v58 }
 0x215   : > { %v636_v59 = vpop.permute.xlu1 %635 }
 0x216   : > { %v639_v60 = vsub.f32 %v609_v41, %v636_v59 }
 0x218   : > { %v1041_v61 = vpop.eup %1040  ;;  %v642_v62 = vmul.f32 1.442695, %v639_v60 }
 0x219   : > { %v648_v63 = vsel %vm541_vm1, %v1041_v61, 0.0 }
 0x21a   : > { %1042 = vpow2.f32 %v642_v62  ;;  %649 = vadd.xlane.f32.xlu2 %v648_v63 }
 0x21b   : > { %1044 = vpow2.f32 %v624_v3 }
 0x220   : > { %v1043_v0 = vpop.eup %1042  ;;  %v669_v22 = vpop.permute.xlu0 %668 }
 0x221   : > { %v651_v1 = vsel %vm541_vm1, %v1043_v0, 0.0  ;;  %v673_v2 = vpack.c.bf16 %v1043_v0, %v1041_v61  ;;  %v1045_v4 = vpop.eup %1044  ;;  %v672_v24 = vmul.f32 %v669_v22, %v660_v21 }
 0x222   : > { %652 = vadd.xlane.f32.xlu1 %v651_v1  ;;  %v646_v6 = vmul.f32 %v1045_v4, %v644_v5 }
 0x223   : > { %972 = vmatmul.msk.bf16.vlgmr.msra.gmra.mxu1 %vm541_vm1, %v673_v2 }
 0x232   : > { %663 = vperm.xlu2 %1037, %v1045_v4  }
 0x28d   : > { %v650_v7 = vpop.xlane.xlu2 %649 }
 0x28e   : > { %v654_v8 = vadd.f32 %v650_v7, %v646_v6 }
 0x290   : > { %657 = vst.msk [vmem:[#allocation4] sm:$0xff] %vm559_vm3, %v654_v8 }
 0x295   : > { %v653_v11 = vpop.xlane.xlu1 %652  ;;  %v664_v15 = vpop.permute.xlu2 %663 }
 0x296   : > { %v655_v12 = vadd.f32 %v653_v11, %v647_v10  ;;  %v671_v17 = vmul.f32 %v664_v15, %v659_v14 }
 0x297   : > { %v707_v13 = vld [vmem:[#allocation4] sm:$0xff] }
 0x298   : > { %658 = vst.msk [vmem:[#allocation4 + $0x8] sm:$0xff] %vm559_vm3, %v655_v12  ;;  %1046 = vrcp.f32 %v707_v13 }
 0x29e   : > { %v1047_v16 = vpop.eup %1046 }
 0x29f   : > { %713 = vperm.xlu0 %1035, %v1047_v16   ;;  %v708_v18 = vld [vmem:[#allocation4 + $0x8] sm:$0xff] }
 0x2a0   : > { %v691_v19 = vpop.f32.mrf.mxu1  ;;  %1048 = vrcp.f32 %v708_v18 }
 0x2a1   : > { %v696_v20 = vadd.f32 %v691_v19, %v671_v17 }
 0x2a3   : > { %698 = vst.msk [vmem:[#allocation5] sm:$0xff] %vm564_vm0, %v696_v20 }
 0x2a6   : > { %v1049_v23 = vpop.eup %1048 }
 0x2a7   : > { %718 = vperm.xlu0 %1035, %v1049_v23  }
 0x2a8   : > { %v693_v25 = vpop.f32.mrf.mxu1 }
 0x2a9   : > { %v697_v26 = vadd.f32 %v693_v25, %v672_v24 }
 0x2aa   : > { %v705_v28 = vld [vmem:[#allocation5] sm:$0xff] }
 0x2ab   : > { %699 = vst.msk [vmem:[#allocation5 + $0x8] sm:$0xff] %vm564_vm0, %v697_v26 }
 0x2b2   : > { %v706_v31 = vld [vmem:[#allocation5 + $0x8] sm:$0xff] }
 0x311   : > { %v714_v27 = vpop.permute.xlu0 %713 }
 0x312   : > { %v721_v29 = vmul.f32 %v714_v27, %v705_v28 }
 0x314   : > { %v723_v30 = vpack.c.bf16 %v721_v29, %v721_v29 }
 0x316   : > { %726 = vst.msk [vmem:[%s516_s24] sm:$0xf] %vm556_vm2, %v723_v30 }
 0x319   : > { %v719_v32 = vpop.permute.xlu0 %718 }
 0x31a   : > { %v722_v33 = vmul.f32 %v719_v32, %v706_v31 }
 0x31c   : > { %v724_v34 = vpack.c.bf16 %v722_v33, %v722_v33 }
 0x31e   : > { %727 = vst.msk [vmem:[%s516_s24 + $0x4] sm:$0xf] %vm556_vm2, %v724_v34 }
 0x31f PF: > { %s17_s28 = sadd.s32 1, %s1088_s28   ;;  %s1258_s24 = smov %s1080_s26 }
 0x320   : > { %p14_p7 = scmp.ge.s32.totalorder %s17_s28, 10   ;;  %s1259_s25 = smov %s1084_s27 }
 0x321   : > { %s1260_s26 = smov %s1263_s29  ;;  %s1261_s27 = smov %s1267_s30 }
 0x322   :  { %16 = sbr.rel (!%p14_p7) target bundleno = 3 (0x3), region = 104 }

// kernel: gqa_forward.7
= control target key start
LH: loop header
LB: loop body
LE: loop exit
PB: predicated region body
PF: predicated region fallthrough
CT: control target
= control target key end

     0   :  { %vm19_vm0 = vcmask 261120   ;;  %v222_v2 = vmov 0.0   ;;  %s285_s0 = inlined_call_operand.vmem [shape: bf16[16,128], index: 0, kind: input, shape index: {}]   ;;  %s286_s1 = inlined_call_operand.vmem [shape: bf16[128,32], index: 1, kind: input, shape index: {}]   ;;  %s287_s2 = inlined_call_operand.vmem [shape: f32[1,32], index: 2, kind: input, shape index: {}]   ;;  %s288_s3 = inlined_call_operand.hbm [shape: f32[16,32], index: 3, kind: output, shape index: {}]  }
   0x1   :  { %v190_v0 = vld [vmem:[%s286_s1 + $0x38] sm:$0xff]  ;;  %v189_v1 = vld [vmem:[%s286_s1 + $0x30] sm:$0xff]  ;;  %20 = vst.msk [vmem:[#allocation2] sm:$0xff] %vm19_vm0, %v222_v2 }
   0x2   :  { %96 = vmatpush.bf16.msra.mxu0 %v190_v0  ;;  %21 = vst.msk [vmem:[#allocation2 + $0x8] sm:$0xff] %vm19_vm0, %v222_v2 }
   0x3   :  { %8 = vsyncpa [#allocation4], 0  ;;  %v188_v3 = vld [vmem:[%s286_s1 + $0x28] sm:$0xff]  ;;  %v187_v4 = vld [vmem:[%s286_s1 + $0x20] sm:$0xff]  ;;  %s134_s7 = sshll.u32 %s288_s3, 4  ;;  %s225_s8 = smov 8   ;;  %s135_s7 = int_to_ptr.hbm [resolvable:$true] %s134_s7 }
   0x4   :  { %v186_v5 = vld [vmem:[%s286_s1 + $0x18] sm:$0xff]  ;;  %v185_v6 = vld [vmem:[%s286_s1 + $0x10] sm:$0xff]  ;;  %v184_v7 = vld [vmem:[%s286_s1 + $0x8] sm:$0xff] }
   0x5   :  { %v183_v8 = vld [vmem:[%s286_s1] sm:$0xff] }
   0x6   :  { %97 = vmatpush.bf16.msra.mxu0 %v189_v1  ;;  %v182_v9 = vld [vmem:[%s285_s0] sm:$0xff]  ;;  %s223_s0 = smov [#allocation3]  }
   0x7   :  { %v195_v14 = vld [vmem:[%s287_s2] ss:$0 sm:$0xff]  ;;  %s132_s1 = sshll.u32 %s223_s0, 4  ;;  %s224_s2 = smov 128   ;;  %s133_s1 = int_to_ptr.vmem [resolvable:$true] %s132_s1 }
   0x8   :  { %v22_v10 = vld [vmem:[#allocation2] sm:$0xff] }
   0x9   :  { %v23_v13 = vld [vmem:[#allocation2 + $0x8] sm:$0xff] }
   0xa   :  { %98 = vmatpush.bf16.msra.mxu0 %v188_v3 }
   0xe   :  { %99 = vmatpush.bf16.msra.mxu0 %v187_v4 }
  0x12   :  { %100 = vmatpush.bf16.msra.mxu0 %v186_v5 }
  0x16   :  { %101 = vmatpush.bf16.msra.mxu0 %v185_v6 }
  0x1a   :  { %102 = vmatpush.bf16.msra.mxu0 %v184_v7 }
  0x1e   :  { %103 = vmatpush.bf16.msra.mxu0 %v183_v8 }
  0x21   :  { %104 = vmatmul.bf16.vlgmr.msra.gmra.mxu0 %v182_v9 }
  0x9e   :  { %v105_v11 = vpop.f32.mrf.mxu0 }
  0x9f   :  { %v110_v12 = vadd.f32 %v105_v11, %v22_v10 }
  0xa1   :  { %113 = vst.msk [vmem:[#allocation2] sm:$0xff] %vm19_vm0, %v110_v12 }
  0xa6   :  { %v107_v15 = vpop.f32.mrf.mxu0 }
  0xa7   :  { %v111_v16 = vadd.f32 %v107_v15, %v23_v13 }
  0xa8   :  { %v118_v17 = vld [vmem:[#allocation2] sm:$0xff] }
  0xa9   :  { %114 = vst.msk [vmem:[#allocation2 + $0x8] sm:$0xff] %vm19_vm0, %v111_v16  ;;  %v124_v18 = vadd.f32 %v195_v14, %v118_v17 }
  0xab   :  { %126 = vst.msk [vmem:[#allocation3] sm:$0xff] %vm19_vm0, %v124_v18 }
  0xb0   :  { %v119_v19 = vld [vmem:[#allocation2 + $0x8] sm:$0xff] }
  0xb1   :  { %v125_v20 = vadd.f32 %v195_v14, %v119_v19 }
  0xb3   :  { %127 = vst.msk [vmem:[#allocation3 + $0x8] sm:$0xff] %vm19_vm0, %v125_v20 }
  0xb4   :  { %140 = dma.vmem_to_hbm [thread:$0]  %s133_s1, 256, %s135_s7, [#allocation4], %s224_s2, %s224_s2, %s225_s8  }
  0xb5   :  { %220 = dma.done.wait [#allocation4], 256  }
  0xb6   :  { %221 = vsyncadd [#allocation4], 4294967040 }
  0xb7   :  { %145 = vsyncpa [#allocation4], 1 }

</bundles_post_ra>
